<compile_context>
chip_gen: v7x
topology: tpu7x:2x2x1
jax: 0.10.0
libtpu: 0.0.40
codegen_flags: <defaults>
</compile_context>

<pallas_src>
import jax
import jax.numpy as jnp
from jax.experimental import pallas as pl
from jax.experimental.pallas import tpu as pltpu


# ----------------------------------------------------------------------------
# Pallas kernel: fused two-head linear (one matmul, 128-lane-wide bf16 output).
# ----------------------------------------------------------------------------
def _fused_two_head_kernel(x_ref, w_ref, b_ref, m_ref, y_ref):
    x = x_ref[...]                                     # (TB, D_in) bf16
    # Single MXU pass over the fused [D_in, 2*D_out] weight, f32 accumulation.
    acc = jnp.dot(x, w_ref[...], preferred_element_type=jnp.float32)
    # Fused bias + per-lane ReLU: mask is 0.0 on head-1 lanes (=> max(v,0)=relu)
    # and -inf on head-2 lanes (=> max(v,-inf)=v, i.e. pass-through).
    acc = jnp.maximum(acc + b_ref[...], m_ref[...])    # one vadd + one vmax
    y_ref[...] = acc.astype(y_ref.dtype)               # lane-dense (TB, 128) bf16 store


def inner_module_forward(x, w_fused, b_fused, relu_mask, d_out, *, max_tb=512):
    """Synthetic wrapped module. Returns (y1, y2, non_tensor_aux)."""
    B, D_in = x.shape
    N2 = w_fused.shape[1]                              # 2 * d_out (== 128 here)

    # Batch tile: cover the whole batch when it fits (grid=(1,) => no per-step
    # pipeline overhead); only tile when B is large AND divides cleanly.
    tb = B if B <= max_tb else (max_tb if B % max_tb == 0 else B)
    grid = (pl.cdiv(B, tb),)

    itemsize = lambda a: a.size * a.dtype.itemsize
    cost = pl.CostEstimate(
        flops=2 * B * D_in * N2,
        transcendentals=0,
        bytes_accessed=itemsize(x) + itemsize(w_fused) + itemsize(b_fused)
                       + itemsize(relu_mask) + B * N2 * 2,   # bf16 output
    )

    y = pl.pallas_call(
        _fused_two_head_kernel,
        out_shape=jax.ShapeDtypeStruct((B, N2), jnp.bfloat16),
        grid=grid,
        in_specs=[
            # x tiled over the batch axis (double-buffered by Pallas).
            pl.BlockSpec((tb, D_in), lambda i: (i, 0)),
            # Fused weight / bias / relu-mask stay VMEM-resident across the grid.
            pl.BlockSpec((D_in, N2), lambda i: (0, 0)),
            pl.BlockSpec((1, N2), lambda i: (0, 0)),
            pl.BlockSpec((1, N2), lambda i: (0, 0)),
        ],
        out_specs=pl.BlockSpec((tb, N2), lambda i: (i, 0)),
        compiler_params=pltpu.CompilerParams(
            dimension_semantics=("parallel",),        # megacore-shardable if grid > 1
        ),
        cost_estimate=cost,
    )(x, w_fused, b_fused, relu_mask)

    # Split the fused output back into the module's two heads (cheap XLA slice
    # that usually fuses away; keeping the kernel output 128-lane-dense avoids
    # masked vst.msk partial stores).
    y1 = y[:, :d_out]
    y2 = y[:, d_out:]
    aux_flag = 7                                      # non-tensor output entry
    return (y1, y2, aux_flag)


# ----------------------------------------------------------------------------
# DetachLayer: run inner module, detach (stop_gradient) every tensor output.
# ----------------------------------------------------------------------------
def detach_layer_forward(x, w_fused, b_fused, relu_mask, d_out):
    # DetachLayer cuts gradients at every tensor output, so also cutting them
    # at the inputs is semantically identical (and identity in the forward).
    # This keeps JAX from trying to linearize through pallas_call, which has
    # no reverse-mode autodiff rule.
    x, w_fused, b_fused, relu_mask = jax.lax.stop_gradient(
        (x, w_fused, b_fused, relu_mask)
    )
    out = inner_module_forward(x, w_fused, b_fused, relu_mask, d_out)
    # PyTorch returns a generator; we return the materialized tuple with
    # identical element-wise semantics (tensors detached, others pass through).
    return tuple(
        jax.lax.stop_gradient(o) if isinstance(o, jax.Array) else o
        for o in out
    )


if __name__ == "__main__":
    key = jax.random.PRNGKey(0)
    B, D_in, D_out = 64, 32, 64                       # fused output = 128 lanes

    k_x, k_w1, k_b1, k_w2, k_b2 = jax.random.split(key, 5)
    x_f32 = jax.random.normal(k_x, (B, D_in), dtype=jnp.float32)
    w1 = jax.random.normal(k_w1, (D_in, D_out), dtype=jnp.float32) * 0.1
    b1 = jax.random.normal(k_b1, (1, D_out), dtype=jnp.float32) * 0.1
    w2 = jax.random.normal(k_w2, (D_in, D_out), dtype=jnp.float32) * 0.1
    b2 = jax.random.normal(k_b2, (1, D_out), dtype=jnp.float32) * 0.1

    # bf16 operands for the MXU (f32 accumulation inside the kernel); fuse the
    # two heads along the output axis so the kernel stores full 128-lane rows.
    x = x_f32.astype(jnp.bfloat16)
    w_fused = jnp.concatenate([w1, w2], axis=1).astype(jnp.bfloat16)
    b_fused = jnp.concatenate([b1, b2], axis=1)       # bias kept in f32
    # ReLU lane mask: 0.0 on head-1 lanes, -inf on head-2 lanes (pass-through).
    relu_mask = jnp.concatenate(
        [jnp.zeros((1, D_out), jnp.float32),
         jnp.full((1, D_out), -jnp.inf, jnp.float32)], axis=1)

    y1, y2, aux = detach_layer_forward(x, w_fused, b_fused, relu_mask, D_out)
    jax.block_until_ready((y1, y2))

    # Reference with the same precision path (bf16 operands, f32 accumulate,
    # final cast to bf16) -> bf16-level tolerances.
    ref = x.astype(jnp.float32) @ w_fused.astype(jnp.float32) + b_fused
    ref1 = jnp.maximum(ref[:, :D_out], 0.0)
    ref2 = ref[:, D_out:]
    assert jnp.allclose(y1.astype(jnp.float32), ref1, atol=2e-2, rtol=2e-2)
    assert jnp.allclose(y2.astype(jnp.float32), ref2, atol=2e-2, rtol=2e-2)
    assert aux == 7
    assert y1.dtype == jnp.bfloat16 and y2.dtype == jnp.bfloat16

    # Detach semantics: gradients do not flow through DetachLayer outputs.
    g = jax.grad(
        lambda xx: jnp.sum(
            detach_layer_forward(xx, w_fused, b_fused, relu_mask, D_out)[0]
        )
    )(x)
    assert jnp.allclose(g.astype(jnp.float32), 0.0)

    print("KERNEL_OK")
</pallas_src>

<mosaic_0001>
module attributes {stable_mosaic.version = 11 : i64} {
  func.func @_fused_two_head_kernel(%arg0: i32, %arg1: memref<64x32xbf16, #tpu.memory_space<vmem>>, %arg2: memref<32x128xbf16, #tpu.memory_space<vmem>>, %arg3: memref<1x128xf32, #tpu.memory_space<vmem>>, %arg4: memref<1x128xf32, #tpu.memory_space<vmem>>, %arg5: memref<64x128xbf16, #tpu.memory_space<vmem>>) attributes {dimension_semantics = [#tpu.dimension_semantics<parallel>], iteration_bounds = array<i64: 1>, scalar_prefetch = 0 : i64, scratch_operands = 0 : i64, tpu.core_type = #tpu.core_type<tc>, window_params = [{transform_indices = @transform_0, window_bounds = array<i64: 64, 32>}, {pipeline_mode = #tpu.pipeline_mode<synchronous>, transform_indices = @transform_1, window_bounds = array<i64: 32, 128>}, {pipeline_mode = #tpu.pipeline_mode<synchronous>, transform_indices = @transform_2, window_bounds = array<i64: 1, 128>}, {pipeline_mode = #tpu.pipeline_mode<synchronous>, transform_indices = @transform_3, window_bounds = array<i64: 1, 128>}, {transform_indices = @transform_4, window_bounds = array<i64: 64, 128>}]} {
    %c0 = arith.constant 0 : index
    %c0_0 = arith.constant 0 : index
    %0 = vector.load %arg1[%c0, %c0_0] : memref<64x32xbf16, #tpu.memory_space<vmem>>, vector<64x32xbf16>
    %c0_1 = arith.constant 0 : index
    %c0_2 = arith.constant 0 : index
    %1 = vector.load %arg2[%c0_1, %c0_2] : memref<32x128xbf16, #tpu.memory_space<vmem>>, vector<32x128xbf16>
    %cst = arith.constant dense<0.000000e+00> : vector<64x128xf32>
    %2 = tpu.matmul %0, %1, %cst {dimension_numbers = #tpu.dot_dimension_numbers<[1], [0], [0], [1], [0, 0, 1, 1], [], []>} : vector<64x32xbf16>, vector<32x128xbf16>, vector<64x128xf32> -> vector<64x128xf32>
    %c0_3 = arith.constant 0 : index
    %c0_4 = arith.constant 0 : index
    %3 = vector.load %arg3[%c0_3, %c0_4] : memref<1x128xf32, #tpu.memory_space<vmem>>, vector<1x128xf32>
    %4 = vector.broadcast %3 : vector<1x128xf32> to vector<64x128xf32>
    %5 = arith.addf %2, %4 : vector<64x128xf32>
    %c0_5 = arith.constant 0 : index
    %c0_6 = arith.constant 0 : index
    %6 = vector.load %arg4[%c0_5, %c0_6] : memref<1x128xf32, #tpu.memory_space<vmem>>, vector<1x128xf32>
    %7 = vector.broadcast %6 : vector<1x128xf32> to vector<64x128xf32>
    %8 = arith.maximumf %5, %7 : vector<64x128xf32>
    %9 = arith.truncf %8 : vector<64x128xf32> to vector<64x128xbf16>
    %c0_7 = arith.constant 0 : index
    %c0_8 = arith.constant 0 : index
    %10 = vector.load %arg5[%c0_7, %c0_8] : memref<64x128xbf16, #tpu.memory_space<vmem>>, vector<64x128xbf16>
    tpu.vector_store %arg5[%c0_7, %c0_8], %9 {strides = array<i32>} : memref<64x128xbf16, #tpu.memory_space<vmem>>, vector<64x128xbf16>,
    return
  }
  func.func @transform_0(%arg0: i32) -> (i32, i32) {
    %c0_i32 = arith.constant 0 : i32
    %c0_i32_0 = arith.constant 0 : i32
    return %arg0, %c0_i32 : i32, i32
  }
  func.func @transform_1(%arg0: i32) -> (i32, i32) {
    %c0_i32 = arith.constant 0 : i32
    %c0_i32_0 = arith.constant 0 : i32
    %c0_i32_1 = arith.constant 0 : i32
    return %c0_i32, %c0_i32_0 : i32, i32
  }
  func.func @transform_2(%arg0: i32) -> (i32, i32) {
    %c0_i32 = arith.constant 0 : i32
    %c0_i32_0 = arith.constant 0 : i32
    %c0_i32_1 = arith.constant 0 : i32
    return %c0_i32, %c0_i32_0 : i32, i32
  }
  func.func @transform_3(%arg0: i32) -> (i32, i32) {
    %c0_i32 = arith.constant 0 : i32
    %c0_i32_0 = arith.constant 0 : i32
    %c0_i32_1 = arith.constant 0 : i32
    return %c0_i32, %c0_i32_0 : i32, i32
  }
  func.func @transform_4(%arg0: i32) -> (i32, i32) {
    %c0_i32 = arith.constant 0 : i32
    %c0_i32_0 = arith.constant 0 : i32
    return %arg0, %c0_i32 : i32, i32
  }
}

</mosaic_0001>

<bundles_post_ra>
// kernel: tpu_custom_call.1
= control target key start
LH: loop header
LB: loop body
LE: loop exit
PB: predicated region body
PF: predicated region fallthrough
CT: control target
= control target key end

     0   :  { %vm70_vm0 = vcmask 261120   ;;  %s389_s0 = inlined_call_operand.vmem [shape: bf16[64,32], index: 0, kind: input, shape index: {}]   ;;  %s390_s1 = inlined_call_operand.vmem [shape: bf16[32,128], index: 1, kind: input, shape index: {}]   ;;  %s391_s2 = inlined_call_operand.vmem [shape: f32[1,128], index: 2, kind: input, shape index: {}]   ;;  %s392_s3 = inlined_call_operand.vmem [shape: f32[1,128], index: 3, kind: input, shape index: {}]   ;;  %s393_s4 = inlined_call_operand.hbm [shape: bf16[64,128], index: 4, kind: output, shape index: {}]  }
   0x1   :  { %v295_v0 = vld [vmem:[%s390_s1] sm:$0xff]   ;;  %v296_v1 = vld [vmem:[%s390_s1 + $0x8] sm:$0xff]   ;;  %v298_v3 = vld [vmem:[%s389_s0 + $0x10] sm:$0xff]  }
   0x2   :  { %276 = vmatprep.subr.bf16.mxu0 %v295_v0  ;;  %288 = vmatprep.subr.bf16.mxu1 %v295_v0  ;;  %v297_v2 = vld [vmem:[%s389_s0] sm:$0xff]   ;;  %v299_v4 = vld [vmem:[%s389_s0 + $0x8] sm:$0xff]   ;;  %v300_v5 = vld [vmem:[%s389_s0 + $0x18] sm:$0xff]  }
   0x3   :  { %277 = vmatpush3.bf16.msra.mxu0 %v295_v0  ;;  %290 = vmatpush3.bf16.msra.mxu1 %v295_v0 }
   0x4   :  { %278 = vmatprep.subr.bf16.mxu0 %v296_v1  ;;  %289 = vmatprep.subr.bf16.mxu1 %v296_v1 }
   0x5   :  { %280 = vmatprep.mubr.msk.bf16.mxu0 %vm70_vm0, %v297_v2  ;;  %284 = vmatprep.mubr.msk.bf16.mxu1 %vm70_vm0, %v298_v3 }
   0x6   :  { %9 = vsyncpa [#allocation3], 0  ;;  %v219_v6 = vld [vmem:[%s391_s2] ss:$0 sm:$0xff]  ;;  %s325_s0 = smov [#allocation2]  }
   0x7   :  { %279 = vmatpush3.bf16.msra.mxu0 %v296_v1  ;;  %291 = vmatpush3.bf16.msra.mxu1 %v296_v1  ;;  %v230_v13 = vld [vmem:[%s392_s3] ss:$0 sm:$0xff]  ;;  %s208_s2 = sshll.u32 %s325_s0, 4  ;;  %s209_s2 = int_to_ptr.vmem [resolvable:$true] %s208_s2 }
   0x8   :  { %s301_s3 = scalar_lea.vmem %s209_s2, 512  ;;  %p306_p1 = scmp.lt.s32.totalorder %s209_s2, %s209_s2 }
   0x9   :  { %p302_p0 = scmp.ne.s32.totalorder %s209_s2, %s301_s3  ;;  %p307_p2 = scmp.lt.s32.totalorder %s301_s3, %s301_s3 }
   0xa   :  { %281 = vmatmul.mubr.msk.bf16.vlgmr.msra.gmra.mrb[0].mxu0 %vm70_vm0, %v299_v4  ;;  %285 = vmatmul.mubr.msk.bf16.vlgmr.msra.gmra.mrb[0].mxu1 %vm70_vm0, %v300_v5 }
   0xb   :  { %p308_p3 = por %p307_p2, %p306_p1 }
   0xd   :  { %p309_p4 = pnand %p308_p3, %p302_p0 }
  0xdd   :  { %v282_v7 = vpop.f32.mrb[0].mxu0  ;;  %v286_v8 = vpop.f32.mrb[0].mxu1 }
  0xde   :  { %v126_v9 = vadd.f32 %v282_v7, %v219_v6  ;;  %v142_v10 = vadd.f32 %v286_v8, %v219_v6  ;;  %v117_v11 = vpop.f32.mrb[1].mxu0  ;;  %v133_v12 = vpop.f32.mrb[1].mxu1 }
  0xdf   :  { %v118_v14 = vadd.f32 %v219_v6, %v117_v11  ;;  %v134_v15 = vadd.f32 %v219_v6, %v133_v12  ;;  %v283_v16 = vpop.f32.mrb[2].mxu0  ;;  %v287_v17 = vpop.f32.mrb[2].mxu1 }
  0xe0   :  { %v129_v18 = vadd.f32 %v283_v16, %v219_v6  ;;  %v145_v19 = vadd.f32 %v287_v17, %v219_v6  ;;  %v120_v20 = vpop.f32.mrb[3].mxu0  ;;  %v136_v21 = vpop.f32.mrb[3].mxu1  ;;  %v157_v24 = vmax.f32 %v126_v9, %v230_v13  ;;  %v161_v25 = vmax.f32 %v142_v10, %v230_v13 }
  0xe1   :  { %v121_v22 = vadd.f32 %v219_v6, %v120_v20  ;;  %v137_v23 = vadd.f32 %v219_v6, %v136_v21  ;;  %v155_v28 = vmax.f32 %v118_v14, %v230_v13  ;;  %v159_v29 = vmax.f32 %v134_v15, %v230_v13 }
  0xe2   :  { %v158_v26 = vmax.f32 %v129_v18, %v230_v13  ;;  %v162_v27 = vmax.f32 %v145_v19, %v230_v13 }
  0xe3   :  { %v156_v30 = vmax.f32 %v121_v22, %v230_v13  ;;  %v160_v31 = vmax.f32 %v137_v23, %v230_v13 }
  0xe4   :  { %v255_v32 = vpack.c.bf16 %v158_v26, %v157_v24  ;;  %v265_v33 = vpack.c.bf16 %v162_v27, %v161_v25 }
  0xe5   :  { %v250_v34 = vpack.c.bf16 %v156_v30, %v155_v28  ;;  %v260_v35 = vpack.c.bf16 %v160_v31, %v159_v29 }
  0xe6   :  { %267 = vst [vmem:[#allocation2 + $0x8] sm:$0xff] %v255_v32   ;;  %269 = vst [vmem:[#allocation2 + $0x18] sm:$0xff] %v265_v33  }
  0xe7   :  { %251 = vst [vmem:[#allocation2] sm:$0xff] %v250_v34   ;;  %268 = vst [vmem:[#allocation2 + $0x10] sm:$0xff] %v260_v35  }
  0xe8   :  { %312 = shalt.err (!%p309_p4)
}
  0xe9   :  { %s313_s6 = scalar_lea.hbm %s393_s4, 512 }
  0xea   :  { %p314_p5 = scmp.ne.s32.totalorder %s393_s4, %s313_s6  ;;  %p317_p6 = scmp.lt.u32.totalorder %s313_s6, %s393_s4 }
  0xec   :  { %p319_p7 = pnand %p317_p6, %p314_p5 }
  0xee   :  { %322 = shalt.err (!%p319_p7)
}
  0xef   :  { %s326_s11 = smov 64   ;;  %s327_s12 = smov 4  }
  0xf0   :  { %214 = dma.vmem_to_hbm [thread:$0]  %s209_s2, 512, %s393_s4, [#allocation3], %s326_s11, %s326_s11, %s327_s12  }
  0xf1   :  { %323 = dma.done.wait [#allocation3], 512  }
  0xf2   :  { %324 = vsyncadd [#allocation3], 4294966784 }
  0xf3   :  { %218 = vsyncpa [#allocation3], 1 }

</bundles_post_ra>
